<compile_context>
chip_gen: v5e
topology: v5e:2x2
jax: 0.10.0
libtpu: 0.0.40
codegen_flags: <defaults>
</compile_context>

<pallas_src>
import functools

import jax
import jax.numpy as jnp
from jax.experimental import pallas as pl
from jax.experimental.pallas import tpu as pltpu

EPS = 1e-3


def _bn_kernel(x_ref, gamma_ref, beta_ref, seg_ref, segT_ref, o_ref, *,
               inv_count, eps):
    """One channel-group tile.

    x_ref / o_ref : (N, TCg, GHW)   GHW = group * H * W on lanes (lane dense)
    gamma_ref     : (TCg, group)    beta_ref : (TCg, group)
    seg_ref       : (GHW, group)    one-hot segment matrix
    segT_ref      : (group, GHW)    its transpose
    """
    x = x_ref[...]
    xf = x.astype(jnp.float32)

    # Fused statistics sweep: fold the batch axis elementwise, then a
    # segmented lane reduction as a small MXU matmul (keeps lane-dense layout).
    xs = jnp.sum(xf, axis=0)                 # (TCg, GHW)
    xsq = jnp.sum(xf * xf, axis=0)           # (TCg, GHW)
    seg = seg_ref[...]
    sum_c = jnp.dot(xs, seg, preferred_element_type=jnp.float32)      # (TCg, g)
    sumsq_c = jnp.dot(xsq, seg, preferred_element_type=jnp.float32)   # (TCg, g)

    mean_c = sum_c * inv_count
    var_c = sumsq_c * inv_count - mean_c * mean_c        # biased variance
    inv_std_c = jax.lax.rsqrt(var_c + eps)

    gamma = gamma_ref[...].astype(jnp.float32)
    beta = beta_ref[...].astype(jnp.float32)
    scale_c = gamma * inv_std_c
    shift_c = beta - mean_c * scale_c

    # Broadcast per-channel scale/shift across their HW lane segments with a
    # tiny (g x GHW) matmul (exact: multiplies by 0/1), then 2 VALU ops/elem.
    segT = segT_ref[...]
    scale_b = jnp.dot(scale_c, segT, preferred_element_type=jnp.float32)
    shift_b = jnp.dot(shift_c, segT, preferred_element_type=jnp.float32)

    if o_ref.dtype == jnp.bfloat16:
        # bf16 VALU on v6e/v7x: normalize pass packs 2x elements per vreg.
        o_ref[...] = (x * scale_b.astype(jnp.bfloat16)[None]
                      + shift_b.astype(jnp.bfloat16)[None])
    else:
        o_ref[...] = (xf * scale_b[None] + shift_b[None]).astype(o_ref.dtype)


def _pick_group(c, hw, target_lanes=512):
    """Smallest divisor g of C with g*HW >= target (lane-dense rows)."""
    if hw >= target_lanes:
        return 1
    g = 1
    for cand in range(1, c + 1):
        if c % cand:
            continue
        g = cand
        if cand * hw >= target_lanes:
            break
    return g


def _pick_cg_tile(n, cg, ghw, itemsize, sublane):
    """Channel-group tile: divides CG, sublane aligned, VMEM budgeted, and
    prefers an even tile count so v7x's 2 TensorCores stay balanced."""
    budget = 8 << 20                        # x blocks: in+out, double-buffered
    per_group = n * ghw * itemsize
    max_tile = max(1, budget // (4 * per_group))

    def layout_ok(tile):
        return tile == cg or tile % sublane == 0

    tiles = sorted({cg // t for t in range(1, cg + 1) if cg % t == 0},
                   reverse=True)            # largest tile first
    fitting = [t for t in tiles if layout_ok(t) and t <= max_tile]
    if not fitting:
        valid = [t for t in tiles if layout_ok(t)]
        return min(valid) if valid else cg
    even_split = [t for t in fitting if (cg // t) % 2 == 0]
    return even_split[0] if even_split else fitting[0]


def batchnorm2d_pallas(x_nchw, gamma, beta, *, eps=EPS, group=None,
                       cg_tile=None):
    """x_nchw: (N, C, H, W); gamma, beta: (C,) -> (N, C, H, W)."""
    n, c, h, w = x_nchw.shape
    hw = h * w
    dtype = x_nchw.dtype
    itemsize = jnp.dtype(dtype).itemsize
    sublane = {4: 8, 2: 16, 1: 32}.get(itemsize, 8)

    if group is None:
        group = _pick_group(c, hw)
    assert c % group == 0, "channel group must divide C"
    cg = c // group
    ghw = group * hw

    # Pure reshapes -- zero data movement, no transposes.
    x3d = x_nchw.reshape(n, cg, ghw)
    g2d = gamma.reshape(cg, group)
    b2d = beta.reshape(cg, group)

    # One-hot segment matrices for the MXU segmented reduce / broadcast.
    seg_ids = jnp.arange(ghw, dtype=jnp.int32) // hw
    grp_ids = jnp.arange(group, dtype=jnp.int32)
    seg = (seg_ids[:, None] == grp_ids[None, :]).astype(jnp.float32)   # (GHW,g)
    segT = (grp_ids[:, None] == seg_ids[None, :]).astype(jnp.float32)  # (g,GHW)

    if cg_tile is None:
        cg_tile = _pick_cg_tile(n, cg, ghw, itemsize, sublane)
    cg_tile = min(cg_tile, cg)
    grid = (pl.cdiv(cg, cg_tile),)

    # VMEM accounting: x/out blocks (double-buffered) + f32 temps + params
    # (lane-padded) + segment matrices.
    x_block = n * cg_tile * ghw * itemsize
    f32_block = cg_tile * ghw * 4
    vmem_needed = (4 * x_block + 4 * f32_block
                   + 4 * cg_tile * 128 * 4
                   + 4 * ghw * 128 * 4)
    vmem_limit = int(min(64 << 20, max(32 << 20, 2 * vmem_needed)))

    cost = pl.CostEstimate(
        flops=10 * n * c * hw + 8 * group * c * hw,
        transcendentals=c,
        bytes_accessed=2 * n * c * hw * itemsize + 8 * c,
    )

    kernel = functools.partial(_bn_kernel, inv_count=1.0 / (n * hw), eps=eps)

    out3d = pl.pallas_call(
        kernel,
        out_shape=jax.ShapeDtypeStruct((n, cg, ghw), dtype),
        grid=grid,
        in_specs=[
            pl.BlockSpec((n, cg_tile, ghw), lambda i: (0, i, 0)),
            pl.BlockSpec((cg_tile, group), lambda i: (i, 0)),
            pl.BlockSpec((cg_tile, group), lambda i: (i, 0)),
            pl.BlockSpec((ghw, group), lambda i: (0, 0)),
            pl.BlockSpec((group, ghw), lambda i: (0, 0)),
        ],
        out_specs=pl.BlockSpec((n, cg_tile, ghw), lambda i: (0, i, 0)),
        compiler_params=pltpu.CompilerParams(
            dimension_semantics=("parallel",),
            vmem_limit_bytes=vmem_limit,
        ),
        cost_estimate=cost,
    )(x3d, g2d, b2d, seg, segT)

    return out3d.reshape(n, c, h, w)


def batchnorm2d_ref(x_nchw, gamma, beta, eps=EPS):
    mean = jnp.mean(x_nchw, axis=(0, 2, 3), keepdims=True)
    var = jnp.mean((x_nchw - mean) ** 2, axis=(0, 2, 3), keepdims=True)
    g = gamma.reshape(1, -1, 1, 1)
    b = beta.reshape(1, -1, 1, 1)
    return (x_nchw - mean) * jax.lax.rsqrt(var + eps) * g + b


if __name__ == "__main__":
    key = jax.random.PRNGKey(0)

    def run_case(n, c, h, w):
        kx, kg, kb = jax.random.split(jax.random.fold_in(key, n * 100000 + c), 3)
        x = jax.random.normal(kx, (n, c, h, w), dtype=jnp.float32)
        # PyTorch default init is weight=1, bias=0; perturb so the affine
        # path is exercised non-trivially.
        gamma = 1.0 + 0.1 * jax.random.normal(kg, (c,), dtype=jnp.float32)
        beta = 0.1 * jax.random.normal(kb, (c,), dtype=jnp.float32)

        out = jax.block_until_ready(batchnorm2d_pallas(x, gamma, beta))
        ref = batchnorm2d_ref(x, gamma, beta)
        assert out.shape == (n, c, h, w)
        assert jnp.allclose(out, ref, atol=1e-4, rtol=1e-4), (
            f"mismatch vs reference for shape {(n, c, h, w)}"
        )

    # Small shapes consistent with the module (original was [1, 3840, 7, 7]).
    run_case(1, 384, 7, 7)    # module flavor: N=1, HW=49 -> group folding
    run_case(2, 256, 8, 8)    # N>1 path
    run_case(1, 64, 16, 16)   # different spatial / group size

    print("KERNEL_OK")
</pallas_src>

<mosaic_0001>
module attributes {stable_mosaic.version = 11 : i64} {
  func.func @_bn_kernel(%arg0: i32, %arg1: memref<1x16x588xf32, #tpu.memory_space<vmem>>, %arg2: memref<16x12xf32, #tpu.memory_space<vmem>>, %arg3: memref<16x12xf32, #tpu.memory_space<vmem>>, %arg4: memref<588x12xf32, #tpu.memory_space<vmem>>, %arg5: memref<12x588xf32, #tpu.memory_space<vmem>>, %arg6: memref<1x16x588xf32, #tpu.memory_space<vmem>>) attributes {dimension_semantics = [#tpu.dimension_semantics<parallel>], iteration_bounds = array<i64: 2>, scalar_prefetch = 0 : i64, scratch_operands = 0 : i64, tpu.core_type = #tpu.core_type<tc>, window_params = [{transform_indices = @transform_0, window_bounds = array<i64: 1, 16, 588>}, {transform_indices = @transform_1, window_bounds = array<i64: 16, 12>}, {transform_indices = @transform_2, window_bounds = array<i64: 16, 12>}, {pipeline_mode = #tpu.pipeline_mode<synchronous>, transform_indices = @transform_3, window_bounds = array<i64: 588, 12>}, {pipeline_mode = #tpu.pipeline_mode<synchronous>, transform_indices = @transform_4, window_bounds = array<i64: 12, 588>}, {transform_indices = @transform_5, window_bounds = array<i64: 1, 16, 588>}]} {
    %c0 = arith.constant 0 : index
    %c0_0 = arith.constant 0 : index
    %c0_1 = arith.constant 0 : index
    %0 = vector.load %arg1[%c0, %c0_0, %c0_1] : memref<1x16x588xf32, #tpu.memory_space<vmem>>, vector<1x16x588xf32>
    %cst = arith.constant dense<0.000000e+00> : vector<16x588xf32>
    %1 = vector.multi_reduction <add>, %0, %cst [0] : vector<1x16x588xf32> to vector<16x588xf32>
    %2 = arith.mulf %0, %0 : vector<1x16x588xf32>
    %cst_2 = arith.constant dense<0.000000e+00> : vector<16x588xf32>
    %3 = vector.multi_reduction <add>, %2, %cst_2 [0] : vector<1x16x588xf32> to vector<16x588xf32>
    %c0_3 = arith.constant 0 : index
    %c0_4 = arith.constant 0 : index
    %4 = vector.load %arg4[%c0_3, %c0_4] : memref<588x12xf32, #tpu.memory_space<vmem>>, vector<588x12xf32>
    %cst_5 = arith.constant dense<0.000000e+00> : vector<16x12xf32>
    %5 = tpu.matmul %1, %4, %cst_5 {dimension_numbers = #tpu.dot_dimension_numbers<[1], [0], [0], [1], [0, 0, 1, 1], [], []>} : vector<16x588xf32>, vector<588x12xf32>, vector<16x12xf32> -> vector<16x12xf32>
    %cst_6 = arith.constant dense<0.000000e+00> : vector<16x12xf32>
    %6 = tpu.matmul %3, %4, %cst_6 {dimension_numbers = #tpu.dot_dimension_numbers<[1], [0], [0], [1], [0, 0, 1, 1], [], []>} : vector<16x588xf32>, vector<588x12xf32>, vector<16x12xf32> -> vector<16x12xf32>
    %cst_7 = arith.constant 0.0204081628 : f32
    %7 = vector.broadcast %cst_7 : f32 to vector<16x12xf32>
    %8 = arith.mulf %5, %7 : vector<16x12xf32>
    %cst_8 = arith.constant 0.0204081628 : f32
    %9 = vector.broadcast %cst_8 : f32 to vector<16x12xf32>
    %10 = arith.mulf %6, %9 : vector<16x12xf32>
    %11 = arith.mulf %8, %8 : vector<16x12xf32>
    %12 = arith.subf %10, %11 : vector<16x12xf32>
    %cst_9 = arith.constant 1.000000e-03 : f32
    %13 = vector.broadcast %cst_9 : f32 to vector<16x12xf32>
    %14 = arith.addf %12, %13 : vector<16x12xf32>
    %15 = math.rsqrt %14 : vector<16x12xf32>
    %c0_10 = arith.constant 0 : index
    %c0_11 = arith.constant 0 : index
    %16 = vector.load %arg2[%c0_10, %c0_11] : memref<16x12xf32, #tpu.memory_space<vmem>>, vector<16x12xf32>
    %c0_12 = arith.constant 0 : index
    %c0_13 = arith.constant 0 : index
    %17 = vector.load %arg3[%c0_12, %c0_13] : memref<16x12xf32, #tpu.memory_space<vmem>>, vector<16x12xf32>
    %18 = arith.mulf %16, %15 : vector<16x12xf32>
    %19 = arith.mulf %8, %18 : vector<16x12xf32>
    %20 = arith.subf %17, %19 : vector<16x12xf32>
    %c0_14 = arith.constant 0 : index
    %c0_15 = arith.constant 0 : index
    %21 = vector.load %arg5[%c0_14, %c0_15] : memref<12x588xf32, #tpu.memory_space<vmem>>, vector<12x588xf32>
    %cst_16 = arith.constant dense<0.000000e+00> : vector<16x588xf32>
    %22 = tpu.matmul %18, %21, %cst_16 {dimension_numbers = #tpu.dot_dimension_numbers<[1], [0], [0], [1], [0, 0, 1, 1], [], []>} : vector<16x12xf32>, vector<12x588xf32>, vector<16x588xf32> -> vector<16x588xf32>
    %cst_17 = arith.constant dense<0.000000e+00> : vector<16x588xf32>
    %23 = tpu.matmul %20, %21, %cst_17 {dimension_numbers = #tpu.dot_dimension_numbers<[1], [0], [0], [1], [0, 0, 1, 1], [], []>} : vector<16x12xf32>, vector<12x588xf32>, vector<16x588xf32> -> vector<16x588xf32>
    %24 = vector.shape_cast %22 : vector<16x588xf32> to vector<1x16x588xf32>
    %25 = arith.mulf %0, %24 : vector<1x16x588xf32>
    %26 = vector.shape_cast %23 : vector<16x588xf32> to vector<1x16x588xf32>
    %27 = arith.addf %25, %26 : vector<1x16x588xf32>
    %c0_18 = arith.constant 0 : index
    %c0_19 = arith.constant 0 : index
    %c0_20 = arith.constant 0 : index
    %28 = vector.load %arg6[%c0_18, %c0_19, %c0_20] : memref<1x16x588xf32, #tpu.memory_space<vmem>>, vector<1x16x588xf32>
    tpu.vector_store %arg6[%c0_18, %c0_19, %c0_20], %27 {strides = array<i32>} : memref<1x16x588xf32, #tpu.memory_space<vmem>>, vector<1x16x588xf32>,
    return
  }
  func.func @transform_0(%arg0: i32) -> (i32, i32, i32) {
    %c0_i32 = arith.constant 0 : i32
    %c0_i32_0 = arith.constant 0 : i32
    %c0_i32_1 = arith.constant 0 : i32
    return %c0_i32, %arg0, %c0_i32_0 : i32, i32, i32
  }
  func.func @transform_1(%arg0: i32) -> (i32, i32) {
    %c0_i32 = arith.constant 0 : i32
    %c0_i32_0 = arith.constant 0 : i32
    return %arg0, %c0_i32 : i32, i32
  }
  func.func @transform_2(%arg0: i32) -> (i32, i32) {
    %c0_i32 = arith.constant 0 : i32
    %c0_i32_0 = arith.constant 0 : i32
    return %arg0, %c0_i32 : i32, i32
  }
  func.func @transform_3(%arg0: i32) -> (i32, i32) {
    %c0_i32 = arith.constant 0 : i32
    %c0_i32_0 = arith.constant 0 : i32
    %c0_i32_1 = arith.constant 0 : i32
    return %c0_i32, %c0_i32_0 : i32, i32
  }
  func.func @transform_4(%arg0: i32) -> (i32, i32) {
    %c0_i32 = arith.constant 0 : i32
    %c0_i32_0 = arith.constant 0 : i32
    %c0_i32_1 = arith.constant 0 : i32
    return %c0_i32, %c0_i32_0 : i32, i32
  }
  func.func @transform_5(%arg0: i32) -> (i32, i32, i32) {
    %c0_i32 = arith.constant 0 : i32
    %c0_i32_0 = arith.constant 0 : i32
    %c0_i32_1 = arith.constant 0 : i32
    return %c0_i32, %arg0, %c0_i32_0 : i32, i32, i32
  }
}

</mosaic_0001>

<bundles_post_ra>
// kernel: tpu_custom_call.1
= control target key start
LH: loop header
LB: loop body
LE: loop exit
PB: predicated region body
PF: predicated region fallthrough
CT: control target
= control target key end

     0   :  { %10 = vsyncpa [#allocation3], 0  ;;  %s2057_s0 = inlined_call_operand.vmem [shape: f32[1,32,588], index: 0, kind: input, shape index: {}]   ;;  %s2058_s1 = inlined_call_operand.vmem [shape: f32[32,12], index: 1, kind: input, shape index: {}]   ;;  %s2059_s2 = inlined_call_operand.vmem [shape: f32[32,12], index: 2, kind: input, shape index: {}]   ;;  %s2060_s3 = inlined_call_operand.vmem [shape: f32[588,12], index: 3, kind: input, shape index: {}]   ;;  %s2061_s4 = inlined_call_operand.vmem [shape: f32[12,588], index: 4, kind: input, shape index: {}]   ;;  %s2062_s5 = inlined_call_operand.hbm [shape: f32[1,32,588], index: 5, kind: output, shape index: {}]  }
   0x1   :  { %12 = vsyncpa [#allocation3 + $0x1], 0  ;;  %s1270_s18 = smov 0   ;;  %s1272_s19 = smov 0  }
   0x2   :  { %s1274_s20 = smov 0   ;;  %s1276_s21 = smov 0  }
   0x3 LB: > { %s1291_s22 = sadd.s32 4294967295, %s1236_s21   ;;  %s1075_s23 = sadd.s32 4294967294, %s1236_s21   ;;  %s1236_s21 = sphi %s1276_s21, %s2078_s21   ;;  %s1232_s20 = sphi %s1274_s20, %s2077_s20   ;;  %s1228_s19 = sphi %s1272_s19, %s2076_s19   ;;  %s1224_s18 = sphi %s1270_s18, %s2075_s18  }
   0x4   : > { %s1295_s24 = sadd.s32 1, %s1236_s21   ;;  %s145_s25 = sadd.s32 1, %s1232_s20 }
   0x5   : > { %s142_s26 = ssub.s32 %s1236_s21, %s1295_s24  ;;  %p155_p0 = scmp.ne.s32.totalorder %s1232_s20, %s1228_s19 }
   0x6   : > { %p143_p1 = scmp.eq.s32.totalorder %s142_s26, 0  ;;  %p156_p2 = scmp.eq.s32.totalorder %s1291_s22, 1 }
   0x7   : > { %p161_p3 = scmp.ne.s32.totalorder %s1228_s19, %s1224_s18  ;;  %p162_p4 = scmp.eq.s32.totalorder %s1075_s23, 1 }
   0x8   : > { %s1306_s27 = scalar_select %p143_p1, %s1232_s20, %s145_s25  }
   0x9   : > { %p1308_p5 = por %p156_p2, %p155_p0  ;;  %p1312_p6 = por %p162_p4, %p161_p3 }
   0xa   : > { %p1078_p7 = scmp.ge.s32.totalorder %s1236_s21, 1  ;;  %p214_p8 = scmp.lt.s32.totalorder %s1236_s21, 3 }
   0xc   : > { %p215_p9 = pnand %p1078_p7, %p214_p8 }
   0xe   : > { %218 = sbr.rel (%p215_p9) target bundleno = 444 (0x1bc), region = 40 }
  0x13   : > { %v1321_v0 = vld [vmem:[%s2060_s3 + $0x78] sm:$0xff]  ;;  %v1331_v2 = vld [vmem:[%s2060_s3 + $0x70] sm:$0xff]  ;;  %v1355_v6 = vld [vmem:[%s2060_s3 + $0x68] sm:$0xff]  ;;  %s1079_s13 = sshll.u32 %s1291_s22, 1  ;;  %vm394_vm0 = vcmask 1043456   ;;  %vm387_vm1 = vcmask 621568  }
  0x14   : > { %v1326_v1 = vld [vmem:[%s2060_s3 + $0x178] sm:$0xff]  ;;  %398 = vmatpush.msra.mxu0 %v1321_v0  ;;  %v1343_v4 = vld [vmem:[%s2060_s3 + $0x170] sm:$0xff]  ;;  %v1365_v8 = vld [vmem:[%s2060_s3 + $0x168] sm:$0xff]  ;;  %p1615_p10 = scmp.lt.s32.totalorder %s1079_s13, 3  ;;  %vm684_vm5 = vcmask 97280   ;;  %s1128_s23 = smul.u32 80, %s1291_s22 }
  0x15   : > { %444 = vmatpush.msra.mxu2 %v1326_v1  ;;  %v1338_v3 = vld [vmem:[%s2060_s3 + $0xf8] sm:$0xff]  ;;  %v1360_v7 = vld [vmem:[%s2060_s3 + $0xf0] sm:$0xff]  ;;  %v1377_v10 = vld [vmem:[%s2060_s3 + $0xe8] sm:$0xff]  ;;  %s1194_s14 = scalar_lea.hbm %s2062_s5, 160 }
  0x16   : > { %v1348_v5 = vld [vmem:[%s2060_s3 + $0x1f8] sm:$0xff]  ;;  %421 = vmatpush.msra.mxu1 %v1338_v3  ;;  %399 = vmatpush.msra.mxu0 %v1331_v2  ;;  %v1372_v9 = vld [vmem:[%s2060_s3 + $0x1f0] sm:$0xff]  ;;  %v1384_v11 = vld [vmem:[%s2060_s3 + $0x60] sm:$0xff]  ;;  %s2080_s13 = smov (!%p1615_p10, %s1079_s13), 3  ;;  %s985_s30 = scalar_lea.hbm %s2062_s5, %s1128_s23 }
  0x17   : > { %467 = vmatpush.msra.mxu3 %v1348_v5  ;;  %445 = vmatpush.msra.mxu2 %v1343_v4  ;;  %v1389_v12 = vld [vmem:[%s2060_s3 + $0x160] sm:$0xff]  ;;  %v1394_v13 = vld [vmem:[%s2060_s3 + $0x1e8] sm:$0xff]  ;;  %v1413_v16 = vld [vmem:[%s2060_s3 + $0x58] sm:$0xff]  ;;  %s1127_s12 = smul.u32 40, %s2080_s13  ;;  %s1082_s8 = sshll.u32 %s2080_s13, 3 }
  0x18   : > { %422 = vmatpush.msra.mxu1 %v1360_v7  ;;  %400 = vmatpush.msra.mxu0 %v1355_v6  ;;  %v1401_v14 = vld [vmem:[%s2060_s3 + $0xe0] sm:$0xff]  ;;  %v1418_v17 = vld [vmem:[%s2060_s3 + $0x158] sm:$0xff]  ;;  %v1437_v20 = vld [vmem:[%s2060_s3 + $0x50] sm:$0xff]  ;;  %s270_s16 = scalar_lea.vmem %s2059_s2, %s1082_s8  ;;  %s250_s13 = sand.u32 1, %s1228_s19  }
  0x19   : > { %468 = vmatpush.msra.mxu3 %v1372_v9  ;;  %446 = vmatpush.msra.mxu2 %v1365_v8  ;;  %v1406_v15 = vld [vmem:[%s2060_s3 + $0x1e0] sm:$0xff]  ;;  %v1425_v18 = vld [vmem:[%s2060_s3 + $0xd8] sm:$0xff]  ;;  %v1442_v21 = vld [vmem:[%s2060_s3 + $0x150] sm:$0xff]  ;;  %s1739_s25 = scalar_lea.vmem %s2057_s0, %s1127_s12  ;;  %s264_s12 = scalar_lea.vmem %s2058_s1, %s1082_s8 }
  0x1a   : > { %423 = vmatpush.msra.mxu1 %v1377_v10  ;;  %401 = vmatpush.msra.mxu0 %v1384_v11  ;;  %v1430_v19 = vld [vmem:[%s2060_s3 + $0x1d8] sm:$0xff]  ;;  %v1449_v22 = vld [vmem:[%s2060_s3 + $0xd0] sm:$0xff]  ;;  %v1461_v24 = vld [vmem:[%s2060_s3 + $0x48] sm:$0xff]  ;;  %s1126_s17 = smul.u32 80, %s250_s13  ;;  %s988_s7 = sshll.u32 %s985_s30, 4  ;;  %s989_s7 = int_to_ptr.hbm [resolvable:$true] %s988_s7 }
  0x1b   : > { %469 = vmatpush.msra.mxu3 %v1394_v13  ;;  %447 = vmatpush.msra.mxu2 %v1389_v12  ;;  %v1454_v23 = vld [vmem:[%s2060_s3 + $0x1d0] sm:$0xff]  ;;  %v1466_v25 = vld [vmem:[%s2060_s3 + $0x148] sm:$0xff]  ;;  %v1485_v28 = vld [vmem:[%s2060_s3 + $0x40] sm:$0xff]  ;;  %s973_s22 = scalar_lea.sflag [#allocation3], %s250_s13  ;;  %s1188_s8 = sshra.s32 %s989_s7, 4  ;;  %s1189_s8 = int_to_ptr.hbm [resolvable:$true] %s1188_s8 }
  0x1c   : > { %424 = vmatpush.msra.mxu1 %v1401_v14  ;;  %402 = vmatpush.msra.mxu0 %v1413_v16  ;;  %v1473_v26 = vld [vmem:[%s2060_s3 + $0xc8] sm:$0xff]  ;;  %v1490_v29 = vld [vmem:[%s2060_s3 + $0x140] sm:$0xff]  ;;  %v1509_v32 = vld [vmem:[%s2060_s3 + $0x38] sm:$0xff]  ;;  %s2000_s10 = scalar_lea.vmem [#allocation2], %s1126_s17  ;;  %s1190_s9 = scalar_lea.hbm %s1189_s8, 80 }
  0x1d   : > { %470 = vmatpush.msra.mxu3 %v1406_v15  ;;  %448 = vmatpush.msra.mxu2 %v1418_v17  ;;  %v1478_v27 = vld [vmem:[%s2060_s3 + $0x1c8] sm:$0xff]  ;;  %v1497_v30 = vld [vmem:[%s2060_s3 + $0xc0] sm:$0xff]  ;;  %v1514_v33 = vld [vmem:[%s2060_s3 + $0x138] sm:$0xff]  ;;  %s986_s6 = sshll.u32 %s2000_s10, 4  ;;  %p1191_p11 = scmp.ne.s32.totalorder %s1189_s8, %s1190_s9  ;;  %s987_s6 = int_to_ptr.vmem [resolvable:$true] %s986_s6 }
  0x1e   : > { %425 = vmatpush.msra.mxu1 %v1425_v18  ;;  %403 = vmatpush.msra.mxu0 %v1437_v20  ;;  %v1502_v31 = vld [vmem:[%s2060_s3 + $0x1c0] sm:$0xff]  ;;  %v1521_v34 = vld [vmem:[%s2060_s3 + $0xb8] sm:$0xff]  ;;  %v1533_v36 = vld [vmem:[%s2060_s3 + $0x30] sm:$0xff]  ;;  %p1195_p0 = scmp.lt.s32.totalorder %s1189_s8, %s2062_s5  ;;  %p1196_p1 = scmp.lt.s32.totalorder %s1194_s14, %s1190_s9 }
  0x1f   : > { %471 = vmatpush.msra.mxu3 %v1430_v19  ;;  %449 = vmatpush.msra.mxu2 %v1442_v21  ;;  %v1526_v35 = vld [vmem:[%s2060_s3 + $0x1b8] sm:$0xff]  ;;  %v1538_v37 = vld [vmem:[%s2060_s3 + $0x130] sm:$0xff]  ;;  %v1557_v40 = vld [vmem:[%s2060_s3 + $0x28] sm:$0xff]  ;;  %p1192_p12 = pnand %p1191_p11, %p1308_p5 }
  0x20   : > { %426 = vmatpush.msra.mxu1 %v1449_v22  ;;  %404 = vmatpush.msra.mxu0 %v1461_v24  ;;  %v1545_v38 = vld [vmem:[%s2060_s3 + $0xb0] sm:$0xff]  ;;  %v1562_v41 = vld [vmem:[%s2060_s3 + $0x128] sm:$0xff]  ;;  %v1582_v44 = vld [vmem:[%s2060_s3 + $0x20] sm:$0xff]  ;;  %p1197_p2 = por %p1196_p1, %p1195_p0 }
  0x21   : > { %472 = vmatpush.msra.mxu3 %v1454_v23  ;;  %450 = vmatpush.msra.mxu2 %v1466_v25  ;;  %v1550_v39 = vld [vmem:[%s2060_s3 + $0x1b0] sm:$0xff]  ;;  %v1569_v42 = vld [vmem:[%s2060_s3 + $0xa8] sm:$0xff]  ;;  %v1587_v45 = vld [vmem:[%s2060_s3 + $0x120] sm:$0xff]  ;;  %p1193_p13 = pneg %p1192_p12 }
  0x22   : > { %427 = vmatpush.msra.mxu1 %v1473_v26  ;;  %405 = vmatpush.msra.mxu0 %v1485_v28  ;;  %v1574_v43 = vld [vmem:[%s2060_s3 + $0x1a8] sm:$0xff]  ;;  %v1594_v46 = vld [vmem:[%s2060_s3 + $0xa0] sm:$0xff]  ;;  %v1606_v48 = vld [vmem:[%s2060_s3 + $0x18] sm:$0xff] }
  0x23   : > { %473 = vmatpush.msra.mxu3 %v1478_v27  ;;  %451 = vmatpush.msra.mxu2 %v1490_v29  ;;  %v1599_v47 = vld [vmem:[%s2060_s3 + $0x1a0] sm:$0xff]  ;;  %v1611_v49 = vld [vmem:[%s2060_s3 + $0x118] sm:$0xff]  ;;  %v1636_v52 = vld [vmem:[%s2060_s3 + $0x10] sm:$0xff]  ;;  %p1198_p3 = pnand %p1197_p2, %p1193_p13 }
  0x24   : > { %428 = vmatpush.msra.mxu1 %v1497_v30  ;;  %406 = vmatpush.msra.mxu0 %v1509_v32  ;;  %v1624_v50 = vld [vmem:[%s2060_s3 + $0x98] sm:$0xff]  ;;  %v1641_v53 = vld [vmem:[%s2060_s3 + $0x110] sm:$0xff]  ;;  %v1660_v56 = vld [vmem:[%s2060_s3 + $0x8] sm:$0xff] }
  0x25   : > { %474 = vmatpush.msra.mxu3 %v1502_v31  ;;  %452 = vmatpush.msra.mxu2 %v1514_v33  ;;  %v1629_v51 = vld [vmem:[%s2060_s3 + $0x198] sm:$0xff]  ;;  %v1648_v54 = vld [vmem:[%s2060_s3 + $0x90] sm:$0xff]  ;;  %v1665_v57 = vld [vmem:[%s2060_s3 + $0x108] sm:$0xff] }
  0x26   : > { %429 = vmatpush.msra.mxu1 %v1521_v34  ;;  %407 = vmatpush.msra.mxu0 %v1533_v36  ;;  %2069 = vst [vmem:[#allocation5_spill] sm:$0xff] %v1629_v51  ;;  %v1653_v55 = vld [vmem:[%s2060_s3 + $0x190] sm:$0xff]  ;;  %v1678_v58 = vld [vmem:[%s2060_s3 + $0x88] sm:$0xff]  ;;  %v1690_v60 = vld [vmem:[%s2060_s3] sm:$0xff] }
  0x27   : > { %475 = vmatpush.msra.mxu3 %v1526_v35  ;;  %453 = vmatpush.msra.mxu2 %v1538_v37  ;;  %2070 = vst [vmem:[#allocation6_spill] sm:$0xff] %v1653_v55  ;;  %v1683_v59 = vld [vmem:[%s2060_s3 + $0x188] sm:$0xff]  ;;  %v1695_v61 = vld [vmem:[%s2060_s3 + $0x100] sm:$0xff] }
  0x28   : > { %430 = vmatpush.msra.mxu1 %v1545_v38  ;;  %408 = vmatpush.msra.mxu0 %v1557_v40  ;;  %2071 = vst [vmem:[#allocation7_spill] sm:$0xff] %v1683_v59  ;;  %v1702_v62 = vld [vmem:[%s2060_s3 + $0x248] sm:$0xf]  ;;  %v1709_v63 = vld [vmem:[%s2060_s3 + $0x80] sm:$0xff] }
  0x29   : > { %476 = vmatpush.msra.mxu3 %v1550_v39  ;;  %454 = vmatpush.msra.mxu2 %v1562_v41 }
  0x2a   : > { %431 = vmatpush.msra.mxu1 %v1569_v42  ;;  %409 = vmatpush.msra.mxu0 %v1582_v44 }
  0x2b   : > { %477 = vmatpush.msra.mxu3 %v1574_v43  ;;  %455 = vmatpush.msra.mxu2 %v1587_v45 }
  0x2c   : > { %432 = vmatpush.msra.mxu1 %v1594_v46  ;;  %410 = vmatpush.msra.mxu0 %v1606_v48 }
  0x2d   : > { %478 = vmatpush.msra.mxu3 %v1599_v47  ;;  %456 = vmatpush.msra.mxu2 %v1611_v49 }
  0x2e   : > { %433 = vmatpush.msra.mxu1 %v1624_v50  ;;  %411 = vmatpush.msra.mxu0 %v1636_v52 }
  0x2f   : > { %479 = vmatpush.msra.mxu3 %v1629_v51  ;;  %457 = vmatpush.msra.mxu2 %v1641_v53  ;;  %v1722_v51 = vld [vmem:[%s2060_s3 + $0x240] sm:$0xff] }
  0x30   : > { %434 = vmatpush.msra.mxu1 %v1648_v54  ;;  %412 = vmatpush.msra.mxu0 %v1660_v56 }
  0x31   : > { %480 = vmatpush.msra.mxu3 %v1653_v55  ;;  %458 = vmatpush.msra.mxu2 %v1665_v57  ;;  %v1714_v55 = vld [vmem:[%s2060_s3 + $0x180] sm:$0xff] }
  0x32   : > { %435 = vmatpush.msra.mxu1 %v1678_v58  ;;  %413 = vmatpush.msra.mxu0 %v1690_v60 }
  0x33   : > { %481 = vmatpush.msra.mxu3 %v1683_v59  ;;  %459 = vmatpush.msra.mxu2 %v1695_v61  ;;  %v1732_v59 = vld [vmem:[%s2060_s3 + $0x238] sm:$0xff] }
  0x34   : > { %1085 = vmatpush.msk.msrb.mxu0 %vm394_vm0, %v1702_v62  ;;  %436 = vmatpush.msra.mxu1 %v1709_v63 }
  0x35   : > { %542 = vmatpush.msrb.mxu2 %v1338_v3  ;;  %482 = vmatpush.msra.mxu3 %v1714_v55  ;;  %v1746_v3 = vld [vmem:[%s2060_s3 + $0x230] sm:$0xff] }
  0x36   : > { %497 = vmatpush.msrb.mxu0 %v1722_v51  ;;  %519 = vmatpush.msrb.mxu1 %v1321_v0  ;;  %v1753_v0 = vld [vmem:[%s1739_s25] sm:$0xff] }
  0x37   : > { %543 = vmatpush.msrb.mxu2 %v1360_v7  ;;  %565 = vmatpush.msrb.mxu3 %v1326_v1  ;;  %v1760_v1 = vld [vmem:[%s2060_s3 + $0x228] sm:$0xff]  ;;  %v1790_v7 = vld [vmem:[%s2060_s3 + $0x210] sm:$0xff] }
  0x38   : > { %498 = vmatpush.msrb.mxu0 %v1732_v59  ;;  %520 = vmatpush.msrb.mxu1 %v1331_v2  ;;  %v1769_v2 = vld [vmem:[%s2060_s3 + $0x220] sm:$0xff] }
  0x39   : > { %544 = vmatpush.msrb.mxu2 %v1377_v10  ;;  %566 = vmatpush.msrb.mxu3 %v1343_v4  ;;  %v1778_v4 = vld [vmem:[%s2060_s3 + $0x218] sm:$0xff] }
  0x3a   : > { %499 = vmatpush.msrb.mxu0 %v1746_v3  ;;  %521 = vmatpush.msrb.mxu1 %v1355_v6  ;;  %v1783_v6 = vld [vmem:[%s1739_s25 + $0x10] sm:$0xff]  ;;  %v1800_v10 = vld [vmem:[%s1739_s25 + $0x18] sm:$0xff] }
  0x3b   : > { %545 = vmatpush.msrb.mxu2 %v1401_v14  ;;  %567 = vmatpush.msrb.mxu3 %v1365_v8  ;;  %v1797_v8 = vld [vmem:[%s1739_s25 + $0x28] sm:$0xff]  ;;  %v1819_v14 = vld [vmem:[%s2060_s3 + $0x200] sm:$0xff] }
  0x3c   : > { %414 = vmatmul.f32.vlgmr.msra.gmra.mxu0 %v1753_v0  ;;  %522 = vmatpush.msrb.mxu1 %v1384_v11  ;;  %v1807_v11 = vld [vmem:[%s2060_s3 + $0x208] sm:$0xff] }
  0x3d   : > { %500 = vmatpush.msrb.mxu0 %v1760_v1  ;;  %546 = vmatpush.msrb.mxu2 %v1425_v18  ;;  %v1844_v18 = vld [vmem:[%s1739_s25 + $0x20] sm:$0xff] }
  0x3e   : > { %568 = vmatpush.msrb.mxu3 %v1389_v12  ;;  %523 = vmatpush.msrb.mxu1 %v1413_v16  ;;  %v1814_v12 = vld [vmem:[%s1739_s25 + $0x8] sm:$0xff]  ;;  %v1832_v16 = vld [vmem:[%s1739_s25 + $0x38] sm:$0xff] }
  0x3f   : > { %501 = vmatpush.msrb.mxu0 %v1769_v2  ;;  %547 = vmatpush.msrb.mxu2 %v1449_v22  ;;  %v298_v22 = vmul.f32 %v1797_v8, %v1797_v8 }
  0x40   : > { %569 = vmatpush.msrb.mxu3 %v1418_v17  ;;  %524 = vmatpush.msrb.mxu1 %v1437_v20  ;;  %v1839_v17 = vld [vmem:[%s1739_s25 + $0x40] sm:$0xff] }
  0x41   : > { %502 = vmatpush.msrb.mxu0 %v1778_v4  ;;  %548 = vmatpush.msrb.mxu2 %v1473_v26  ;;  %v2074_v26 = vld [vmem:[#allocation7_spill] sm:$0xff] }
  0x42   : > { %570 = vmatpush.msrb.mxu3 %v1442_v21  ;;  %460 = vmatmul.f32.vlgmr.msra.gmra.mxu2 %v1783_v6  ;;  %v300_v21 = vmul.f32 %v1832_v16, %v1832_v16 }
  0x43   : > { %503 = vmatpush.msrb.mxu0 %v1790_v7  ;;  %525 = vmatpush.msrb.mxu1 %v1461_v24  ;;  %v2073_v24 = vld [vmem:[#allocation6_spill] sm:$0xff] }
  0x44   : > { %549 = vmatpush.msrb.mxu2 %v1497_v30  ;;  %571 = vmatpush.msrb.mxu3 %v1466_v25  ;;  %v296_v25 = vmul.f32 %v1800_v10, %v1800_v10 }
  0x45   : > { %417 = vmatmul.f32.gmra.mxu0 %v1797_v8  ;;  %483 = vmatmul.f32.vlgmr.msra.gmra.mxu3 %v1800_v10 }
  0x46   : > { %504 = vmatpush.msrb.mxu0 %v1807_v11  ;;  %526 = vmatpush.msrb.mxu1 %v1485_v28  ;;  %v301_v28 = vmul.f32 %v1839_v17, %v1839_v17 }
  0x47   : > { %550 = vmatpush.msrb.mxu2 %v1521_v34  ;;  %572 = vmatpush.msrb.mxu3 %v1490_v29 }
  0x48   : > { %437 = vmatmul.f32.vlgmr.msra.gmra.mxu1 %v1814_v12  ;;  %505 = vmatpush.msrb.mxu0 %v1819_v14 }
  0x49   : > { %527 = vmatpush.msrb.mxu1 %v1509_v32  ;;  %551 = vmatpush.msrb.mxu2 %v1545_v38 }
  0x4a   : > { %573 = vmatpush.msrb.mxu3 %v1514_v33  ;;  %588 = vmatpush.msra.mxu0 %v1348_v5  ;;  %v1851_v5 = vld [vmem:[%s1739_s25 + $0x30] sm:$0xff] }
  0x4b   : > { %528 = vmatpush.msrb.mxu1 %v1533_v36  ;;  %552 = vmatpush.msrb.mxu2 %v1569_v42  ;;  %v299_v20 = vmul.f32 %v1851_v5, %v1851_v5 }
  0x4c   : > { %574 = vmatpush.msrb.mxu3 %v1538_v37  ;;  %589 = vmatpush.msra.mxu0 %v1372_v9  ;;  %v294_v9 = vmul.f32 %v1814_v12, %v1814_v12 }
  0x4d   : > { %463 = vmatmul.f32.gmra.mxu2 %v1832_v16  ;;  %529 = vmatpush.msrb.mxu1 %v1557_v40 }
  0x4e   : > { %553 = vmatpush.msrb.mxu2 %v1594_v46  ;;  %575 = vmatpush.msrb.mxu3 %v1562_v41 }
  0x4f   : > { %590 = vmatpush.msra.mxu0 %v1394_v13  ;;  %486 = vmatmul.f32.gmra.mxu3 %v1839_v17  ;;  %v1873_v13 = vld [vmem:[%s1739_s25 + $0x48] sm:$0xff] }
  0x50   : > { %1086 = vmatmul.msk.f32.vlgmr.msrb.gmra.mxu0 %vm387_vm1, %v1844_v18  ;;  %530 = vmatpush.msrb.mxu1 %v1582_v44  ;;  %v302_v29 = vmul.f32 %v1873_v13, %v1873_v13 }
  0x51   : > { %554 = vmatpush.msrb.mxu2 %v1624_v50  ;;  %576 = vmatpush.msrb.mxu3 %v1587_v45  ;;  %v1927_v50 = vld [vmem:[%s2061_s4 + $0x30] sm:$0xf] }
  0x52   : > { %591 = vmatpush.msra.mxu0 %v1406_v15  ;;  %440 = vmatmul.f32.gmra.mxu1 %v1851_v5  ;;  %v295_v15 = vmul.f32 %v1783_v6, %v1783_v6 }
  0x53   : > { %531 = vmatpush.msrb.mxu1 %v1606_v48  ;;  %555 = vmatpush.msrb.mxu2 %v1648_v54  ;;  %v674_v54 = vld [vmem:[%s2061_s4] sm:$0xff] }
  0x54   : > { %577 = vmatpush.msrb.mxu3 %v1611_v49  ;;  %592 = vmatpush.msra.mxu0 %v1430_v19  ;;  %v293_v19 = vmul.f32 %v1753_v0, %v1753_v0  ;;  %v679_v49 = vld [vmem:[%s2061_s4 + $0x28] sm:$0xf] }
  0x55   : > { %532 = vmatpush.msrb.mxu1 %v1636_v52  ;;  %556 = vmatpush.msrb.mxu2 %v1678_v58 }
  0x56   : > { %578 = vmatpush.msrb.mxu3 %v1641_v53  ;;  %593 = vmatpush.msra.mxu0 %v1454_v23  ;;  %v2072_v23 = vld [vmem:[#allocation5_spill] sm:$0xff] }
  0x57   : > { %533 = vmatpush.msrb.mxu1 %v1660_v56  ;;  %557 = vmatpush.msrb.mxu2 %v1709_v63  ;;  %v678_v56 = vld [vmem:[%s2061_s4 + $0x20] sm:$0xff] }
  0x58   : > { %579 = vmatpush.msrb.mxu3 %v1665_v57  ;;  %558 = vmatmul.f32.vlgmr.msrb.gmra.mxu2 %v294_v9  ;;  %v682_v9 = vld [vmem:[%s2061_s4 + $0x40] sm:$0xf] }
  0x59   : > { %594 = vmatpush.msra.mxu0 %v1478_v27  ;;  %534 = vmatpush.msrb.mxu1 %v1690_v60  ;;  %v297_v27 = vmul.f32 %v1844_v18, %v1844_v18 }
  0x5a   : > { %1087 = vmatmul.msk.f32.gmra.mxu0 %vm387_vm1, %v1873_v13  ;;  %580 = vmatpush.msrb.mxu3 %v1695_v61 }
  0x5b   : > { %581 = vmatmul.f32.vlgmr.msrb.gmra.mxu3 %v295_v15  ;;  %595 = vmatpush.msra.mxu0 %v1502_v31 }
  0x5c   : > { %1088 = vmatpush.msk.msra.mxu1 %vm394_vm0, %v1702_v62  ;;  %1091 = vmatpush.msk.msra.mxu2 %vm394_vm0, %v679_v49 }
  0x5d   : > { %596 = vmatpush.msra.mxu0 %v1526_v35  ;;  %535 = vmatmul.f32.vlgmr.msrb.gmra.mxu1 %v293_v19 }
  0x5e   : > { %618 = vmatpush.msra.mxu1 %v1722_v51  ;;  %v683_v51 = vld [vmem:[%s2061_s4 + $0x48] sm:$0xf]  ;;  %1094 = vmatpush.msk.msra.mxu3 %vm394_vm0, %v1927_v50 }
  0x5f   : > { %597 = vmatpush.msra.mxu0 %v1550_v39  ;;  %721 = vmatpush.msra.mxu2 %v674_v54 }
  0x60   : > { %619 = vmatpush.msra.mxu1 %v1732_v59  ;;  %561 = vmatmul.f32.gmra.mxu2 %v299_v20 }
  0x61   : > { %598 = vmatpush.msra.mxu0 %v1574_v43 }
  0x62   : > { %620 = vmatpush.msra.mxu1 %v1746_v3 }
  0x63   : > { %584 = vmatmul.f32.gmra.mxu3 %v300_v21  ;;  %599 = vmatpush.msra.mxu0 %v1599_v47  ;;  %v676_v21 = vld [vmem:[%s2061_s4 + $0x10] sm:$0xff] }
  0x64   : > { %621 = vmatpush.msra.mxu1 %v1760_v1 }
  0x65   : > { %600 = vmatpush.msra.mxu0 %v2072_v23  ;;  %538 = vmatmul.f32.gmra.mxu1 %v298_v22  ;;  %v677_v22 = vld [vmem:[%s2061_s4 + $0x18] sm:$0xff] }
  0x66   : > { %622 = vmatpush.msra.mxu1 %v1769_v2 }
  0x67   : > { %601 = vmatpush.msra.mxu0 %v2073_v24 }
  0x68   : > { %623 = vmatpush.msra.mxu1 %v1778_v4 }
  0x69   : > { %602 = vmatpush.msra.mxu0 %v2074_v26 }
  0x6a   : > { %624 = vmatpush.msra.mxu1 %v1790_v7 }
  0x6b   : > { %603 = vmatpush.msra.mxu0 %v1714_v55  ;;  %v1941_v55 = vld [vmem:[%s2061_s4 + $0x8] sm:$0xff] }
  0x6c   : > { %625 = vmatpush.msra.mxu1 %v1807_v11  ;;  %604 = vmatmul.f32.vlgmr.msra.gmra.mxu0 %v296_v25 }
  0x6d   : > { %1103 = vmatpush.msk.msrb.mxu0 %vm394_vm0, %v683_v51  ;;  %744 = vmatpush.msra.mxu3 %v1941_v55 }
  0x6e   : > { %626 = vmatpush.msra.mxu1 %v1819_v14  ;;  %v681_v14 = vld [vmem:[%s2061_s4 + $0x38] sm:$0xf] }
  0x6f   : > { %1089 = vmatmul.msk.f32.vlgmr.msra.gmra.mxu1 %vm387_vm1, %v297_v27  ;;  %813 = vmatpush.msrb.mxu0 %v678_v56 }
  0x70   : > { %1106 = vmatpush.msk.msrb.mxu1 %vm394_vm0, %v679_v49  ;;  %1097 = vmatpush.msk.msrb.mxu2 %vm394_vm0, %v681_v14 }
  0x71   : > { %1100 = vmatpush.msk.msrb.mxu3 %vm394_vm0, %v682_v9  ;;  %1115 = vmatpush.msk.msra.mxu0 %vm394_vm0, %v682_v9 }
  0x72   : > { %842 = vmatpush.msrb.mxu1 %v674_v54  ;;  %767 = vmatpush.msrb.mxu2 %v676_v21  ;;  %v667_v54 = vld [vmem:[%s270_s16 + $0x8] sm:$0xff] }
  0x73   : > { %790 = vmatpush.msrb.mxu3 %v677_v22  ;;  %911 = vmatpush.msra.mxu0 %v677_v22 }
  0x74   : > { %607 = vmatmul.f32.gmra.mxu0 %v301_v28  ;;  %1118 = vmatpush.msk.msra.mxu1 %vm394_vm0, %v683_v51  ;;  %v665_v51 = vld [vmem:[%s264_s12 + $0x8] sm:$0xff] }
  0x76   : > { %934 = vmatpush.msra.mxu1 %v678_v56 }
  0x77   : > { %1090 = vmatmul.msk.f32.gmra.mxu1 %vm387_vm1, %v302_v29 }
  0xb9   : > { %v415_v30 = vpop.f32.mrf.mxu0 }
  0xc2   : > { %v418_v33 = vpop.f32.mrf.mxu0 }
  0xc5   : > { %v438_v31 = vpop.f32.mrf.mxu1  ;;  %v461_v32 = vpop.f32.mrf.mxu2 }
  0xc6   : > { %v439_v40 = vadd.f32 %v438_v31, %v415_v30 }
  0xc8   : > { %v484_v34 = vpop.f32.mrf.mxu3  ;;  %v462_v41 = vadd.f32 %v461_v32, %v439_v40 }
  0xca   : > { %v485_v45 = vadd.f32 %v484_v34, %v462_v41 }
  0xcd   : > { %v507_v37 = vpop.f32.mrf.mxu0 }
  0xce   : > { %v508_v52 = vadd.f32 %v507_v37, %v485_v45  ;;  %v666_v45 = vld [vmem:[%s270_s16] sm:$0xff] }
  0xcf   : > { %v441_v35 = vpop.f32.mrf.mxu1 }
  0xd0   : > { %v464_v36 = vpop.f32.mrf.mxu2  ;;  %v442_v46 = vadd.f32 %v441_v35, %v418_v33  ;;  %v634_v61 = vmul.f32 0.020408163, %v508_v52 }
  0xd2   : > { %v487_v38 = vpop.f32.mrf.mxu3  ;;  %v465_v53 = vadd.f32 %v464_v36, %v442_v46  ;;  %v638_v4 = vmul.f32 %v634_v61, %v634_v61 }
  0xd4   : > { %v488_v62 = vadd.f32 %v487_v38, %v465_v53 }
  0xd7   : > { %v510_v43 = vpop.f32.mrf.mxu0 }
  0xd8   : > { %v511_v7 = vadd.f32 %v510_v43, %v488_v62 }
  0xda   : > { %v536_v39 = vpop.f32.mrf.mxu1  ;;  %v635_v24 = vmul.f32 0.020408163, %v511_v7 }
  0xdb   : > { %v559_v42 = vpop.f32.mrf.mxu2 }
  0xdc   : > { %v560_v48 = vadd.f32 %v559_v42, %v536_v39  ;;  %v639_v28 = vmul.f32 %v635_v24, %v635_v24  ;;  %v664_v39 = vld [vmem:[%s264_s12] sm:$0xff] }
  0xde   : > { %v582_v47 = vpop.f32.mrf.mxu3 }
  0xdf   : > { %v583_v57 = vadd.f32 %v582_v47, %v560_v48 }
  0xe2   : > { %v539_v44 = vpop.f32.mrf.mxu1 }
  0xe3   : > { %v562_v58 = vpop.f32.mrf.mxu2 }
  0xe4   : > { %v563_v63 = vadd.f32 %v562_v58, %v539_v44 }
  0xe6   : > { %v585_v1 = vpop.f32.mrf.mxu3 }
  0xe7   : > { %v586_v15 = vadd.f32 %v585_v1, %v563_v63 }
  0xe9   : > { %v605_v59 = vpop.f32.mrf.mxu0 }
  0xea   : > { %v606_v60 = vadd.f32 %v605_v59, %v583_v57 }
  0xec   : > { %v628_v3 = vpop.f32.mrf.mxu1 }
  0xed   : > { %v629_v2 = vadd.f32 %v628_v3, %v606_v60 }
  0xef   : > { %v636_v11 = vmul.f32 0.020408163, %v629_v2 }
  0xf1   : > { %v640_v19 = vsub.f32 %v636_v11, %v638_v4  ;;  %v608_v20 = vpop.f32.mrf.mxu0 }
  0xf2   : > { %v609_v23 = vadd.f32 %v608_v20, %v586_v15 }
  0xf3   : > { %v642_v25 = vadd.f32 0.001, %v640_v19 }
  0xf4   : > { %v631_v26 = vpop.f32.mrf.mxu1 }
  0xf5   : > { %1170 = vrsqrt.f32 %v642_v25  ;;  %v632_v27 = vadd.f32 %v631_v26, %v609_v23  ;;  %vm650_vm3 = vweird.f32 %v642_v25 }
  0xf7   : > { %v637_v29 = vmul.f32 0.020408163, %v632_v27 }
  0xf9   : > { %v641_v30 = vsub.f32 %v637_v29, %v639_v28 }
  0xfb   : > { %v1171_v31 = vpop.eup %1170  ;;  %v643_v32 = vadd.f32 0.001, %v641_v30 }
  0xfc   : > { %v645_v33 = vmul.f32 %v1171_v31, %v642_v25  ;;  %vm651_vm2 = vweird.f32 %v1171_v31 }
  0xfd   : > { %1172 = vrsqrt.f32 %v643_v32  ;;  %vm652_vm4 = vmor %vm650_vm3, %vm651_vm2  ;;  %vm660_vm7 = vweird.f32 %v643_v32 }
  0xfe   : > { %v646_v34 = vmul.f32 %v1171_v31, %v645_v33 }
 0x100   : > { %v647_v35 = vmul.f32 0.5, %v646_v34 }
 0x102   : > { %v648_v36 = vsub.f32 1.5, %v647_v35 }
 0x103   : > { %v1173_v37 = vpop.eup %1172 }
 0x104   : > { %v649_v38 = vmul.f32 %v1171_v31, %v648_v36  ;;  %v655_v40 = vmul.f32 %v1173_v37, %v643_v32  ;;  %vm661_vm6 = vweird.f32 %v1173_v37 }
 0x105   : > { %vm662_vm8 = vmor %vm660_vm7, %vm661_vm6 }
 0x106   : > { %v653_v41 = vsel %vm652_vm4, %v1171_v31, %v649_v38  ;;  %v656_v42 = vmul.f32 %v1173_v37, %v655_v40 }
 0x107   : > { %v668_v43 = vmul.f32 %v664_v39, %v653_v41 }
 0x108   : > { %v657_v44 = vmul.f32 0.5, %v656_v42 }
 0x109   : > { %1092 = vmatmul.msk.f32.vlgmr.msra.gmra.mxu2 %vm684_vm5, %v668_v43  ;;  %1095 = vmatmul.msk.f32.vlgmr.msra.gmra.mxu3 %vm684_vm5, %v668_v43  ;;  %v670_v46 = vmul.f32 %v668_v43, %v634_v61 }
 0x10a   : > { %v658_v47 = vsub.f32 1.5, %v657_v44  ;;  %1104 = vmatmul.msk.f32.vlgmr.msrb.gmra.mxu0 %vm684_vm5, %v668_v43  ;;  %1109 = vmatpush.msk.msra.mxu2 %vm394_vm0, %v1927_v50 }
 0x10b   : > { %v672_v48 = vsub.f32 %v666_v45, %v670_v46  ;;  %1112 = vmatpush.msk.msra.mxu3 %vm394_vm0, %v681_v14 }
 0x10c   : > { %v659_v49 = vmul.f32 %v1173_v37, %v658_v47  ;;  %865 = vmatpush.msra.mxu2 %v1941_v55 }
 0x10d   : > { %1107 = vmatmul.msk.f32.vlgmr.msrb.gmra.mxu1 %vm684_vm5, %v672_v48  ;;  %888 = vmatpush.msra.mxu3 %v676_v21 }
 0x10e   : > { %v663_v52 = vsel %vm662_vm8, %v1173_v37, %v659_v49 }
 0x10f   : > { %v669_v53 = vmul.f32 %v665_v51, %v663_v52 }
 0x111   : > { %1093 = vmatmul.msk.f32.gmra.mxu2 %vm684_vm5, %v669_v53  ;;  %1096 = vmatmul.msk.f32.gmra.mxu3 %vm684_vm5, %v669_v53  ;;  %v671_v50 = vmul.f32 %v669_v53, %v635_v24 }
 0x112   : > { %1105 = vmatmul.msk.f32.gmra.mxu0 %vm684_vm5, %v669_v53 }
 0x113   : > { %v673_v56 = vsub.f32 %v667_v54, %v671_v50 }
 0x115   : > { %1108 = vmatmul.msk.f32.gmra.mxu1 %vm684_vm5, %v673_v56 }
 0x119   : > { %1098 = vmatmul.msk.f32.vlgmr.msrb.gmra.mxu2 %vm684_vm5, %v668_v43  ;;  %1101 = vmatmul.msk.f32.vlgmr.msrb.gmra.mxu3 %vm684_vm5, %v668_v43 }
 0x11a   : > { %1116 = vmatmul.msk.f32.vlgmr.msra.gmra.mxu0 %vm684_vm5, %v672_v48 }
 0x11d   : > { %1119 = vmatmul.msk.f32.vlgmr.msra.gmra.mxu1 %vm684_vm5, %v672_v48 }
 0x121   : > { %1099 = vmatmul.msk.f32.gmra.mxu2 %vm684_vm5, %v669_v53  ;;  %1102 = vmatmul.msk.f32.gmra.mxu3 %vm684_vm5, %v669_v53 }
 0x122   : > { %1117 = vmatmul.msk.f32.gmra.mxu0 %vm684_vm5, %v673_v56 }
 0x125   : > { %1120 = vmatmul.msk.f32.gmra.mxu1 %vm684_vm5, %v673_v56 }
 0x129   : > { %1110 = vmatmul.msk.f32.vlgmr.msra.gmra.mxu2 %vm684_vm5, %v672_v48  ;;  %1113 = vmatmul.msk.f32.vlgmr.msra.gmra.mxu3 %vm684_vm5, %v672_v48 }
 0x131   : > { %1111 = vmatmul.msk.f32.gmra.mxu2 %vm684_vm5, %v673_v56  ;;  %1114 = vmatmul.msk.f32.gmra.mxu3 %vm684_vm5, %v673_v56 }
 0x187   : > { %v815_v55 = vpop.f32.mrf.mxu0 }
 0x188   : > { %v946_v7 = vmul.f32 %v815_v55, %v1844_v18 }
 0x18a   : > { %v844_v57 = vpop.f32.mrf.mxu1 }
 0x18c   : > { %v723_v58 = vpop.f32.mrf.mxu2  ;;  %v746_v59 = vpop.f32.mrf.mxu3 }
 0x18d   : > { %v942_v60 = vmul.f32 %v723_v58, %v1753_v0 }
 0x18f   : > { %v952_v61 = vadd.f32 %v942_v60, %v844_v57  ;;  %v818_v62 = vpop.f32.mrf.mxu0 }
 0x190   : > { %v951_v21 = vmul.f32 %v818_v62, %v1873_v13 }
 0x191   : > { %962 = vst [vmem:[%s2000_s10] sm:$0xff] %v952_v61 }
 0x192   : > { %v847_v63 = vpop.f32.mrf.mxu1 }
 0x194   : > { %v726_v3 = vpop.f32.mrf.mxu2  ;;  %v749_v1 = vpop.f32.mrf.mxu3 }
 0x195   : > { %v947_v2 = vmul.f32 %v726_v3, %v1797_v8 }
 0x197   : > { %v957_v4 = vadd.f32 %v947_v2, %v847_v63  ;;  %v913_v11 = vpop.f32.mrf.mxu0 }
 0x199   : > { %967 = vst [vmem:[%s2000_s10 + $0x28] sm:$0xff] %v957_v4 }
 0x19a   : > { %v936_v0 = vpop.f32.mrf.mxu1 }
 0x19b   : > { %v956_v14 = vadd.f32 %v946_v7, %v936_v0 }
 0x19c   : > { %v769_v9 = vpop.f32.mrf.mxu2  ;;  %v792_v15 = vpop.f32.mrf.mxu3 }
 0x19d   : > { %966 = vst.msk [vmem:[%s2000_s10 + $0x20] sm:$0xff] %vm387_vm1, %v956_v14  ;;  %v945_v19 = vmul.f32 %v792_v15, %v1800_v10  ;;  %v943_v10 = vmul.f32 %v746_v59, %v1814_v12  ;;  %v944_v27 = vmul.f32 %v769_v9, %v1783_v6  ;;  %v948_v12 = vmul.f32 %v749_v1, %v1851_v5 }
 0x19f   : > { %v955_v20 = vadd.f32 %v945_v19, %v913_v11  ;;  %v916_v25 = vpop.f32.mrf.mxu0 }
 0x1a1   : > { %965 = vst [vmem:[%s2000_s10 + $0x18] sm:$0xff] %v955_v20 }
 0x1a2   : > { %v939_v8 = vpop.f32.mrf.mxu1 }
 0x1a3   : > { %v961_v18 = vadd.f32 %v951_v21, %v939_v8 }
 0x1a4   : > { %v772_v22 = vpop.f32.mrf.mxu2  ;;  %v795_v23 = vpop.f32.mrf.mxu3 }
 0x1a5   : > { %971 = vst.msk [vmem:[%s2000_s10 + $0x48] sm:$0xff] %vm387_vm1, %v961_v18  ;;  %v950_v24 = vmul.f32 %v795_v23, %v1839_v17  ;;  %v949_v6 = vmul.f32 %v772_v22, %v1832_v16 }
 0x1a7   : > { %v960_v26 = vadd.f32 %v950_v24, %v916_v25 }
 0x1a9   : > { %970 = vst [vmem:[%s2000_s10 + $0x40] sm:$0xff] %v960_v26 }
 0x1ac   : > { %v867_v13 = vpop.f32.mrf.mxu2  ;;  %v890_v28 = vpop.f32.mrf.mxu3 }
 0x1ad   : > { %v953_v29 = vadd.f32 %v943_v10, %v867_v13  ;;  %v954_v30 = vadd.f32 %v944_v27, %v890_v28 }
 0x1af   : > { %963 = vst [vmem:[%s2000_s10 + $0x8] sm:$0xff] %v953_v29 }
 0x1b0   : > { %964 = vst [vmem:[%s2000_s10 + $0x10] sm:$0xff] %v954_v30 }
 0x1b4   : > { %v870_v17 = vpop.f32.mrf.mxu2  ;;  %v893_v31 = vpop.f32.mrf.mxu3 }
 0x1b5   : > { %v958_v32 = vadd.f32 %v948_v12, %v870_v17  ;;  %v959_v33 = vadd.f32 %v949_v6, %v893_v31 }
 0x1b7   : > { %968 = vst [vmem:[%s2000_s10 + $0x30] sm:$0xff] %v958_v32 }
 0x1b8   : > { %969 = vst [vmem:[%s2000_s10 + $0x38] sm:$0xff] %v959_v33 }
 0x1b9   : > { %1201 = shalt.err (!%p1198_p3)
}
 0x1ba   : > { %s1238_s13 = smov 640   ;;  %s1239_s17 = smov 40  }
 0x1bb   : > { %1129 = dma.vmem_to_hbm [thread:$0]  (%p1308_p5), %s987_s6, 1280, %s989_s7, %s973_s22, %s1238_s13, %s1238_s13, %s1239_s17  }
 0x1bc PF: > { %p1135_p4 = scmp.ge.s32.totalorder %s1236_s21, 2  ;;  %s1003_s10 = sand.u32 1, %s1224_s18  }
 0x1bd   : > { %s1004_s23 = scalar_lea.sflag [#allocation3], %s1003_s10 }
 0x1be   : > { %p1132_p7 = pnand %p1135_p4, %p1312_p6 }
 0x1c0   : > { %p1133_p8 = pneg %p1132_p7 }
 0x1c2   : > { %1219 = dma.done.wait (%p1133_p8), %s1004_s23, 1280  }
 0x1c3   : > { %1221 = vsyncadd (%p1133_p8), %s1004_s23, 4294966016  ;;  %p15_p9 = scmp.ge.s32.totalorder %s1295_s24, 4   ;;  %s2075_s18 = smov %s1228_s19 }
 0x1c4   : > { %s2076_s19 = smov %s1232_s20  ;;  %s2077_s20 = smov %s1306_s27 }
 0x1c5   : > { %s2078_s21 = smov %s1295_s24  ;;  %17 = sbr.rel (!%p15_p9) target bundleno = 3 (0x3), region = 81 }
 0x1ca   :  { %1010 = vsyncpa [#allocation3], 1 }
 0x1cb   :  { %1012 = vsyncpa [#allocation3 + $0x1], 1 }

</bundles_post_ra>
